<compile_context>
chip_gen: v7x
topology: tpu7x:2x2x1
jax: 0.10.0
libtpu: 0.0.40
codegen_flags: <defaults>
</compile_context>

<pallas_src>
import jax
import jax.numpy as jnp
from jax.experimental import pallas as pl
from jax.experimental.pallas import tpu as pltpu


def _make_se_kernel(inv_l, use_mxu):
    """inv_l = 1/L (original, unpadded length); use_mxu picks the 1x1-conv codegen."""

    def kernel(x_ref, w1_ref, b1_ref, w2_ref, b2_ref, o_ref):
        x = x_ref[...]                                          # (Nb, C, Lp), input dtype

        # adaptive_avg_pool1d(x, 1): lane reduce over L, accumulate in f32.
        # Zero-padding along L does not change the sum; divide by the true L.
        mean = jnp.sum(x, axis=-1, dtype=jnp.float32) * inv_l   # (Nb, C)

        if use_mxu:
            # w1_ref: (C, Cmid), w2_ref: (Cmid, C) -- pre-transposed by the wrapper.
            h = jnp.dot(mean, w1_ref[...].astype(jnp.float32),
                        preferred_element_type=jnp.float32)     # (Nb, Cmid)
            h = jnp.maximum(h + b1_ref[...], 0.0)               # ReLU
            se = jnp.dot(h, w2_ref[...].astype(jnp.float32),
                         preferred_element_type=jnp.float32)    # (Nb, C)
        else:
            # Small C: keep the tiny convs off the MXU (VPU multiply + XLU lane reduce).
            h = jnp.sum(mean[:, None, :] * w1_ref[...][None].astype(jnp.float32),
                        axis=-1)                                # (Nb, Cmid)
            h = jnp.maximum(h + b1_ref[...], 0.0)               # ReLU
            se = jnp.sum(h[:, None, :] * w2_ref[...][None].astype(jnp.float32),
                         axis=-1)                               # (Nb, C)

        se = jax.nn.sigmoid(se + b2_ref[...])                   # exp/recip on the EUP

        # Broadcast residual add over L in the input dtype (bf16 stays bf16).
        o_ref[...] = (x + se.astype(x.dtype)[:, :, None]).astype(o_ref.dtype)

    return kernel


def _vmem_capacity_bytes():
    try:
        cap = int(pltpu.get_tpu_info().vmem_capacity_bytes)
        if cap > 0:
            return cap
    except Exception:
        pass
    return 64 << 20      # conservative fallback (v7x per-TC physical VMEM)


def _pick_batch_tile(N, C, Lp, dtype_bytes, vmem_cap):
    """Batch rows per grid step: ~4-8 MiB streaming tiles, and >= 2 grid steps."""
    row_bytes = max(C * Lp * dtype_bytes, 1)
    # ~4 MiB target on v7x (64 MiB VMEM), ~8 MiB on v5e/v6e (128 MiB VMEM).
    target = max(1 << 20, min(8 << 20, vmem_cap // 16))
    nb = max(1, min(N, target // row_bytes))
    if N >= 2:
        nb = min(nb, N // 2)     # guarantee grid >= 2 so both v7x TCs get work
    return max(1, nb)


def se_block_pallas(x, w1, b1, w2, b2):
    """x: (N, C, L); w1: (Cmid, C); b1: (Cmid,) or (1, Cmid); w2: (C, Cmid); b2: (C,) or (1, C)."""
    N, C, L = x.shape
    Cmid = w1.shape[0]
    b1 = jnp.reshape(b1, (1, Cmid)).astype(jnp.float32)
    b2 = jnp.reshape(b2, (1, C)).astype(jnp.float32)

    # Lane-density guard: pad L to a multiple of 128 so the streaming loads and
    # stores are unmasked full-lane ops (no-op when L is already lane-aligned).
    Lp = L if L % 128 == 0 else ((L + 127) // 128) * 128
    x_in = x if Lp == L else jnp.pad(x, ((0, 0), (0, 0), (0, Lp - L)))

    dtype_bytes = jnp.dtype(x.dtype).itemsize
    vmem_cap = _vmem_capacity_bytes()
    Nb = _pick_batch_tile(N, C, Lp, dtype_bytes, vmem_cap)
    grid = (pl.cdiv(N, Nb),)

    # Route the tiny 1x1 convs to the MXU only once the contraction is a real
    # MXU shape; for small C the VPU/XLU path is cheaper and keeps the MXU idle.
    use_mxu = (C >= 128) and (Nb >= 8)
    if use_mxu:
        w1_arg, w2_arg = w1.T, w2.T                           # (C, Cmid), (Cmid, C)
        w1_spec = pl.BlockSpec((C, Cmid), lambda n: (0, 0))
        w2_spec = pl.BlockSpec((Cmid, C), lambda n: (0, 0))
    else:
        w1_arg, w2_arg = w1, w2                               # (Cmid, C), (C, Cmid)
        w1_spec = pl.BlockSpec((Cmid, C), lambda n: (0, 0))
        w2_spec = pl.BlockSpec((C, Cmid), lambda n: (0, 0))

    # VMEM: in + out tiles double-buffered (4x tile) plus the tiny weights, with
    # 2x headroom, clamped generation-aware (v7x has 64 MiB, v5e/v6e 128 MiB).
    tile_bytes = Nb * C * Lp * dtype_bytes
    weight_bytes = 4 * (w1.size + w2.size + b1.size + b2.size)
    vmem_need = 4 * tile_bytes + 2 * weight_bytes
    vmem_limit = int(min(max(2 * vmem_need, 32 << 20), (vmem_cap * 3) // 4))

    # TODO(synk): add an L-tiled two-pass fallback (mean pass + streaming-add pass)
    # for very large C*L where even a single (1, C, L) row exceeds the VMEM budget.

    kernel = _make_se_kernel(1.0 / L, use_mxu)
    out = pl.pallas_call(
        kernel,
        out_shape=jax.ShapeDtypeStruct((N, C, Lp), x.dtype),
        grid=grid,
        in_specs=[
            pl.BlockSpec((Nb, C, Lp), lambda n: (n, 0, 0)),   # x slab (Nb batch rows)
            w1_spec,                                          # conv1 weight
            pl.BlockSpec((1, Cmid), lambda n: (0, 0)),        # conv1 bias (lane-major)
            w2_spec,                                          # conv2 weight
            pl.BlockSpec((1, C), lambda n: (0, 0)),           # conv2 bias (lane-major)
        ],
        out_specs=pl.BlockSpec((Nb, C, Lp), lambda n: (n, 0, 0)),
        compiler_params=pltpu.CompilerParams(
            dimension_semantics=("parallel",),
            vmem_limit_bytes=vmem_limit,
        ),
    )(x_in, w1_arg, b1, w2_arg, b2)

    return out[:, :, :L] if Lp != L else out


def se_block_ref(x, w1, b1, w2, b2):
    # pure-JAX reference for correctness check
    mean = jnp.mean(x, axis=-1, keepdims=True)                       # (N, C, 1)
    h = jnp.einsum("oc,ncl->nol", w1, mean) + b1.reshape(1, -1, 1)   # (N, Cmid, 1)
    h = jnp.maximum(h, 0.0)
    se = jnp.einsum("co,nol->ncl", w2, h) + b2.reshape(1, -1, 1)     # (N, C, 1)
    return x + jax.nn.sigmoid(se)


if __name__ == "__main__":
    # Module config: se_block(in_layer=16, out_layer=32) -> hidden = out_layer // 8 = 4
    N, C, L = 2, 16, 128
    out_layer = 32
    Cmid = out_layer // 8

    key = jax.random.PRNGKey(0)
    kx, k1, k2, k3, k4 = jax.random.split(key, 5)

    x = jax.random.normal(kx, (N, C, L), dtype=jnp.float32)
    # Deterministic synthetic parameters (Conv1d k=1 weights squeezed to 2-D,
    # biases as 1-D vectors like PyTorch's conv.bias).
    w1 = 0.1 * jax.random.normal(k1, (Cmid, C), dtype=jnp.float32)   # conv1.weight[:, :, 0]
    b1 = 0.1 * jax.random.normal(k2, (Cmid,), dtype=jnp.float32)     # conv1.bias
    w2 = 0.1 * jax.random.normal(k3, (C, Cmid), dtype=jnp.float32)   # conv2.weight[:, :, 0]
    b2 = 0.1 * jax.random.normal(k4, (C,), dtype=jnp.float32)        # conv2.bias

    out = se_block_pallas(x, w1, b1, w2, b2)
    out = jax.block_until_ready(out)

    ref = se_block_ref(x, w1, b1, w2, b2)
    assert out.shape == (N, C, L)
    assert jnp.allclose(out, ref, atol=1e-5, rtol=1e-5), "mismatch vs reference"

    print("KERNEL_OK")
</pallas_src>

<mosaic_0001>
module attributes {stable_mosaic.version = 11 : i64} {
  func.func @kernel(%arg0: i32, %arg1: memref<1x16x128xf32, #tpu.memory_space<vmem>>, %arg2: memref<4x16xf32, #tpu.memory_space<vmem>>, %arg3: memref<1x4xf32, #tpu.memory_space<vmem>>, %arg4: memref<16x4xf32, #tpu.memory_space<vmem>>, %arg5: memref<1x16xf32, #tpu.memory_space<vmem>>, %arg6: memref<1x16x128xf32, #tpu.memory_space<vmem>>) attributes {dimension_semantics = [#tpu.dimension_semantics<parallel>], iteration_bounds = array<i64: 2>, scalar_prefetch = 0 : i64, scratch_operands = 0 : i64, tpu.core_type = #tpu.core_type<tc>, window_params = [{transform_indices = @transform_0, window_bounds = array<i64: 1, 16, 128>}, {pipeline_mode = #tpu.pipeline_mode<synchronous>, transform_indices = @transform_1, window_bounds = array<i64: 4, 16>}, {pipeline_mode = #tpu.pipeline_mode<synchronous>, transform_indices = @transform_2, window_bounds = array<i64: 1, 4>}, {pipeline_mode = #tpu.pipeline_mode<synchronous>, transform_indices = @transform_3, window_bounds = array<i64: 16, 4>}, {pipeline_mode = #tpu.pipeline_mode<synchronous>, transform_indices = @transform_4, window_bounds = array<i64: 1, 16>}, {transform_indices = @transform_5, window_bounds = array<i64: 1, 16, 128>}]} {
    %c0 = arith.constant 0 : index
    %c0_0 = arith.constant 0 : index
    %c0_1 = arith.constant 0 : index
    %0 = vector.load %arg1[%c0, %c0_0, %c0_1] : memref<1x16x128xf32, #tpu.memory_space<vmem>>, vector<1x16x128xf32>
    %cst = arith.constant dense<0.000000e+00> : vector<1x16xf32>
    %1 = vector.multi_reduction <add>, %0, %cst [2] : vector<1x16x128xf32> to vector<1x16xf32>
    %cst_2 = arith.constant 7.812500e-03 : f32
    %2 = vector.broadcast %cst_2 : f32 to vector<1x16xf32>
    %3 = arith.mulf %1, %2 : vector<1x16xf32>
    %4 = vector.shape_cast %3 : vector<1x16xf32> to vector<1x1x16xf32>
    %c0_3 = arith.constant 0 : index
    %c0_4 = arith.constant 0 : index
    %5 = vector.load %arg2[%c0_3, %c0_4] : memref<4x16xf32, #tpu.memory_space<vmem>>, vector<4x16xf32>
    %6 = vector.shape_cast %5 : vector<4x16xf32> to vector<1x4x16xf32>
    %7 = vector.broadcast %4 : vector<1x1x16xf32> to vector<1x4x16xf32>
    %8 = arith.mulf %7, %6 : vector<1x4x16xf32>
    %cst_5 = arith.constant dense<0.000000e+00> : vector<1x4xf32>
    %9 = vector.multi_reduction <add>, %8, %cst_5 [2] : vector<1x4x16xf32> to vector<1x4xf32>
    %c0_6 = arith.constant 0 : index
    %c0_7 = arith.constant 0 : index
    %10 = vector.load %arg3[%c0_6, %c0_7] : memref<1x4xf32, #tpu.memory_space<vmem>>, vector<1x4xf32>
    %11 = arith.addf %9, %10 : vector<1x4xf32>
    %cst_8 = arith.constant 0.000000e+00 : f32
    %12 = vector.broadcast %cst_8 : f32 to vector<1x4xf32>
    %13 = arith.maximumf %11, %12 : vector<1x4xf32>
    %14 = vector.shape_cast %13 : vector<1x4xf32> to vector<1x1x4xf32>
    %c0_9 = arith.constant 0 : index
    %c0_10 = arith.constant 0 : index
    %15 = vector.load %arg4[%c0_9, %c0_10] : memref<16x4xf32, #tpu.memory_space<vmem>>, vector<16x4xf32>
    %16 = vector.shape_cast %15 : vector<16x4xf32> to vector<1x16x4xf32>
    %17 = vector.broadcast %14 : vector<1x1x4xf32> to vector<1x16x4xf32>
    %18 = arith.mulf %17, %16 : vector<1x16x4xf32>
    %cst_11 = arith.constant dense<0.000000e+00> : vector<1x16xf32>
    %19 = vector.multi_reduction <add>, %18, %cst_11 [2] : vector<1x16x4xf32> to vector<1x16xf32>
    %c0_12 = arith.constant 0 : index
    %c0_13 = arith.constant 0 : index
    %20 = vector.load %arg5[%c0_12, %c0_13] : memref<1x16xf32, #tpu.memory_space<vmem>>, vector<1x16xf32>
    %21 = arith.addf %19, %20 : vector<1x16xf32>
    %22 = arith.negf %21 : vector<1x16xf32>
    %23 = math.exp %22 : vector<1x16xf32>
    %cst_14 = arith.constant 1.000000e+00 : f32
    %24 = vector.broadcast %cst_14 : f32 to vector<1x16xf32>
    %25 = arith.addf %24, %23 : vector<1x16xf32>
    %26 = arith.divf %24, %25 : vector<1x16xf32>
    %27 = vector.shape_cast %26 : vector<1x16xf32> to vector<1x16x1xf32>
    %28 = vector.broadcast %27 : vector<1x16x1xf32> to vector<1x16x128xf32>
    %29 = arith.addf %0, %28 : vector<1x16x128xf32>
    %c0_15 = arith.constant 0 : index
    %c0_16 = arith.constant 0 : index
    %c0_17 = arith.constant 0 : index
    %30 = vector.load %arg6[%c0_15, %c0_16, %c0_17] : memref<1x16x128xf32, #tpu.memory_space<vmem>>, vector<1x16x128xf32>
    tpu.vector_store %arg6[%c0_15, %c0_16, %c0_17], %29 {strides = array<i32>} : memref<1x16x128xf32, #tpu.memory_space<vmem>>, vector<1x16x128xf32>,
    return
  }
  func.func @transform_0(%arg0: i32) -> (i32, i32, i32) {
    %c0_i32 = arith.constant 0 : i32
    %c0_i32_0 = arith.constant 0 : i32
    %c0_i32_1 = arith.constant 0 : i32
    return %arg0, %c0_i32, %c0_i32_0 : i32, i32, i32
  }
  func.func @transform_1(%arg0: i32) -> (i32, i32) {
    %c0_i32 = arith.constant 0 : i32
    %c0_i32_0 = arith.constant 0 : i32
    %c0_i32_1 = arith.constant 0 : i32
    return %c0_i32, %c0_i32_0 : i32, i32
  }
  func.func @transform_2(%arg0: i32) -> (i32, i32) {
    %c0_i32 = arith.constant 0 : i32
    %c0_i32_0 = arith.constant 0 : i32
    %c0_i32_1 = arith.constant 0 : i32
    return %c0_i32, %c0_i32_0 : i32, i32
  }
  func.func @transform_3(%arg0: i32) -> (i32, i32) {
    %c0_i32 = arith.constant 0 : i32
    %c0_i32_0 = arith.constant 0 : i32
    %c0_i32_1 = arith.constant 0 : i32
    return %c0_i32, %c0_i32_0 : i32, i32
  }
  func.func @transform_4(%arg0: i32) -> (i32, i32) {
    %c0_i32 = arith.constant 0 : i32
    %c0_i32_0 = arith.constant 0 : i32
    %c0_i32_1 = arith.constant 0 : i32
    return %c0_i32, %c0_i32_0 : i32, i32
  }
  func.func @transform_5(%arg0: i32) -> (i32, i32, i32) {
    %c0_i32 = arith.constant 0 : i32
    %c0_i32_0 = arith.constant 0 : i32
    %c0_i32_1 = arith.constant 0 : i32
    return %arg0, %c0_i32, %c0_i32_0 : i32, i32, i32
  }
}

</mosaic_0001>

<bundles_post_ra>
// kernel: tpu_custom_call.1
= control target key start
LH: loop header
LB: loop body
LE: loop exit
PB: predicated region body
PF: predicated region fallthrough
CT: control target
= control target key end

     0   :  { %10 = vsyncpa [#allocation3], 0  ;;  %s1310_s0 = inlined_call_operand.hbm [shape: f32[2,16,128], index: 0, kind: input, shape index: {}]   ;;  %s1311_s1 = inlined_call_operand.vmem [shape: f32[4,16], index: 1, kind: input, shape index: {}]   ;;  %s1312_s2 = inlined_call_operand.vmem [shape: f32[1,4], index: 2, kind: input, shape index: {}]   ;;  %s1313_s3 = inlined_call_operand.vmem [shape: f32[16,4], index: 3, kind: input, shape index: {}]   ;;  %s1314_s4 = inlined_call_operand.vmem [shape: f32[1,16], index: 4, kind: input, shape index: {}]   ;;  %s1315_s5 = inlined_call_operand.hbm [shape: f32[2,16,128], index: 5, kind: output, shape index: {}]  }
   0x1   :  { %12 = vsyncpa [#allocation3 + $0x1], 0 }
   0x2   :  { %13 = vsyncpa [#allocation4], 0 }
   0x3   :  { %15 = vsyncpa [#allocation4 + $0x1], 0  ;;  %s1057_s18 = smov 0   ;;  %s1059_s19 = smov 0  }
   0x4   :  { %s1061_s20 = smov 0   ;;  %s1063_s21 = smov 0  }
   0x5 LB: > { %s1078_s22 = sadd.s32 4294967295, %s1018_s21   ;;  %s841_s23 = sadd.s32 4294967294, %s1018_s21   ;;  %s1018_s21 = sphi %s1063_s21, %s1328_s21   ;;  %s1014_s20 = sphi %s1061_s20, %s1327_s20   ;;  %s1010_s19 = sphi %s1059_s19, %s1326_s19   ;;  %s1006_s18 = sphi %s1057_s18, %s1325_s18  }
   0x6   : > { %s1082_s24 = sadd.s32 1, %s1018_s21   ;;  %s28_s25 = sadd.s32 1, %s1014_s20 }
   0x7   : > { %s25_s26 = ssub.s32 %s1018_s21, %s1082_s24  ;;  %p35_p0 = scmp.ne.s32.totalorder %s1014_s20, %s1010_s19 }
   0x8   : > { %p26_p1 = scmp.eq.s32.totalorder %s25_s26, 0  ;;  %p36_p2 = scmp.eq.s32.totalorder %s1018_s21, 0 }
   0x9   : > { %p41_p3 = scmp.ne.s32.totalorder %s1010_s19, %s1006_s18  ;;  %p42_p4 = scmp.eq.s32.totalorder %s1078_s22, 0 }
   0xa   : > { %s1094_s27 = scalar_select %p26_p1, %s1014_s20, %s28_s25  }
   0xb   : > { %p1096_p5 = por %p36_p2, %p35_p0  ;;  %p1100_p6 = por %p42_p4, %p41_p3 }
   0xc   : > { %p149_p7 = scmp.eq.s32.totalorder %s1078_s22, 1  ;;  %p155_p8 = scmp.eq.s32.totalorder %s841_s23, 1 }
   0xd   : > { %p873_p10 = scmp.lt.s32.totalorder %s1018_s21, 2  ;;  %s187_s7 = sand.u32 1, %s1014_s20  }
   0xe   : > { %p1107_p11 = por %p149_p7, %p35_p0  ;;  %p1111_p12 = por %p155_p8, %p41_p3 }
   0xf   : > { %s859_s8 = sshll.u32 %s1018_s21, 8  ;;  %s844_s9 = sshll.u32 %s187_s7, 4 }
  0x10   : > { %s1319_s30 = scalar_select %p1107_p11, 1, 0 }
  0x11   : > { %s1320_s6 = scalar_select %p1111_p12, 1, 0 }
  0x12   : > { %s1120_s12 = scalar_lea.hbm %s1310_s0, %s859_s8  ;;  %s191_s13 = scalar_lea.vmem [#allocation2], %s844_s9 }
  0x13   : > { %s198_s14 = sshll.u32 %s191_s13, 4  ;;  %p1124_p13 = pnand %p873_p10, %p1096_p5  ;;  %s1128_s14 = int_to_ptr.vmem [resolvable:$true] %s198_s14 }
  0x14   : > { %s1130_s16 = scalar_lea.sflag [#allocation3], %s187_s7  ;;  %s922_s17 = scalar_lea.hbm %s1120_s12, 256 }
  0x15   : > { %p923_p0 = scmp.ne.s32.totalorder %s1120_s12, %s922_s17  ;;  %p924_p1 = pneg %p1124_p13 }
  0x16   : > { %s927_s26 = scalar_lea.hbm %s1310_s0, 512  ;;  %p928_p4 = scmp.lt.u32.totalorder %s1120_s12, %s1310_s0 }
  0x17   : > { %p925_p2 = pnand %p924_p1, %p923_p0  ;;  %p929_p5 = scmp.lt.u32.totalorder %s927_s26, %s922_s17 }
  0x18   : > { %p931_p8 = scmp.lt.u32.totalorder %s922_s17, %s1120_s12 }
  0x19   : > { %p926_p3 = pneg %p925_p2  ;;  %p930_p7 = por %p929_p5, %p928_p4 }
  0x1b   : > { %p932_p10 = por %p931_p8, %p930_p7 }
  0x1d   : > { %p933_p9 = pnand %p932_p10, %p926_p3 }
  0x1f   : > { %936 = shalt.err (!%p933_p9)
}
  0x20   : > { %s937_s7 = scalar_lea.vmem %s1128_s14, 256  ;;  %s1020_s9 = smov [#allocation2]  }
  0x21   : > { %p938_p0 = scmp.ne.s32.totalorder %s1128_s14, %s937_s7  ;;  %s942_s10 = sshll.u32 %s1020_s9, 4  ;;  %s943_s10 = int_to_ptr.vmem [resolvable:$false] %s942_s10 }
  0x22   : > { %s944_s11 = scalar_lea.vmem %s943_s10, 512  ;;  %p945_p11 = scmp.lt.s32.totalorder %s1128_s14, %s943_s10 }
  0x23   : > { %p940_p2 = pnand %p938_p0, %p924_p1  ;;  %p946_p4 = scmp.lt.s32.totalorder %s944_s11, %s937_s7 }
  0x25   : > { %p941_p12 = pneg %p940_p2  ;;  %p947_p5 = por %p946_p4, %p945_p11 }
  0x27   : > { %p948_p7 = pnand %p947_p5, %p941_p12 }
  0x29   : > { %951 = shalt.err (!%p948_p7)
}
  0x2a   : > { %s1021_s13 = smov 128   ;;  %s1022_s17 = smov 8  }
  0x2b   : > { %868 = dma.hbm_to_vmem [thread:$0]  (!%p1124_p13), %s1120_s12, 256, %s1128_s14, %s1130_s16, %s1021_s13, %s1021_s13, %s1022_s17  }
  0x2c   : > { %p847_p9 = scmp.ge.s32.totalorder %s1018_s21, 1  ;;  %p206_p1 = scmp.lt.s32.totalorder %s1018_s21, 3 }
  0x2e   : > { %p207_p3 = pnand %p847_p9, %p206_p1 }
  0x2f   : > { %s1161_s23 = sand.u32 (!%p207_p3), 1, %s1010_s19  }
  0x30   : > { %210 = sbr.rel (%p207_p3) target bundleno = 982 (0x3d6), region = 40  ;;  %s848_s25 = sshll.u32 (!%p207_p3), %s1161_s23, 4 }
  0x31   : > { %s213_s26 = scalar_lea.sflag (!%p207_p3), [#allocation3], %s1161_s23  ;;  %s216_s28 = scalar_lea.vmem (!%p207_p3), [#allocation2], %s848_s25 }
  0x37   : > { %997 = dma.done.wait (%p1100_p6), %s213_s26, 256  }
  0x38   : > { %999 = vsyncadd (%p1100_p6), %s213_s26, 4294967040  ;;  %v253_v0 = vlaneseq  ;;  %v1177_v3 = vld [vmem:[%s216_s28] sm:$0xff]  ;;  %v1184_v6 = vld [vmem:[%s216_s28 + $0x8] sm:$0xff]  ;;  %v1023_v12 = vmov 0   ;;  %vm356_vm0 = vcmask 130112   ;;  %vm385_vm1 = vcmask 1041409  }
  0x39   : > { %v251_v4 = vld [vmem:[%s1311_s1] sm:$0xf]  ;;  %245 = vadd.xlane.f32.xlu0 %v1177_v3  ;;  %912 = vset.pattern.permute.xlu1 %v1023_v12  ;;  %v1193_v30 = vld [vmem:[%s1313_s3 + $0x8] sm:$0xff]  ;;  %vm387_vm2 = vcmask 1042434   ;;  %vm389_vm3 = vcmask 1043459   ;;  %vm392_vm4 = vcmask 125952  }
  0x3a   : > { %v1172_v1 = vshrl.u32 %v253_v0, 7  ;;  %913 = vset.pattern.permute.xlu0 %v1023_v12  ;;  %v850_v38 = vld [vmem:[%s1312_s2] ss:$0 sm:$0xff]  ;;  %v346_v58 = vand.u32 127, %v253_v0  ;;  %vm687_vm5 = vcmask 1044484   ;;  %vm689_vm6 = vcmask 1045509  }
  0x3b   : > { %v408_v39 = vld [vmem:[%s1313_s3] sm:$0xff]  ;;  %vm691_vm7 = vcmask 1046534   ;;  %vm693_vm8 = vcmask 1047559   ;;  %vm704_vm9 = vcmask 31744   ;;  %s242_s13 = scalar_lea.vmem [#allocation5], %s848_s25  ;;  %s860_s26 = sshll.u32 %s1078_s22, 8 }
  0x3c   : > { %v1175_v2 = vsub.s32 0, %v1172_v1  ;;  %v266_v7 = vsub.s32 1, %v1172_v1  ;;  %v277_v9 = vsub.s32 2, %v1172_v1  ;;  %v288_v11 = vsub.s32 3, %v1172_v1  ;;  %s768_s17 = sshll.u32 %s242_s13, 4  ;;  %s1265_s14 = scalar_lea.hbm %s1315_s5, %s860_s26  ;;  %s1259_s17 = int_to_ptr.vmem [resolvable:$true] %s768_s17 }
  0x3d   : > { %247 = vadd.xlane.f32.xlu0 %v1184_v6  ;;  %v456_v34 = vsub.s32 6, %v1172_v1  ;;  %v442_v47 = vsub.s32 4, %v1172_v1  ;;  %v449_v50 = vsub.s32 5, %v1172_v1  ;;  %v463_v54 = vsub.s32 7, %v1172_v1  ;;  %s755_s25 = scalar_lea.sflag [#allocation4], %s1161_s23  ;;  %s952_s22 = scalar_lea.vmem %s1259_s17, 256 }
  0x3e   : > { %v256_v5 = vrot.slane %v251_v4, %v1175_v2  ;;  %v267_v8 = vrot.slane %v251_v4, %v266_v7  ;;  %v278_v10 = vrot.slane %v251_v4, %v277_v9  ;;  %v289_v13 = vrot.slane %v251_v4, %v288_v11  ;;  %p953_p6 = scmp.ne.s32.totalorder %s1259_s17, %s952_s22  ;;  %p1322_p11 = scmp.ne.s32.totalorder %s1319_s30, 0 }
  0x3f   : > { %v492_v33 = vrot.slane %v1193_v30, %v288_v11  ;;  %v513_v37 = vrot.slane %v1193_v30, %v456_v34  ;;  %v415_v40 = vrot.slane %v408_v39, %v1175_v2  ;;  %v422_v41 = vrot.slane %v408_v39, %v266_v7  ;;  %s1024_s29 = smov [#allocation5]  }
  0x40   : > { %258 = vbcast.lane.b32.xlu1 %v256_v5, 256  ;;  %v471_v42 = vrot.slane %v1193_v30, %v1175_v2  ;;  %v478_v43 = vrot.slane %v1193_v30, %v266_v7  ;;  %v429_v44 = vrot.slane %v408_v39, %v277_v9  ;;  %v485_v45 = vrot.slane %v1193_v30, %v277_v9  ;;  %p954_p12 = pnand %p953_p6, %p1322_p11  ;;  %s956_s15 = sshll.u32 %s1024_s29, 4  ;;  %s957_s15 = int_to_ptr.vmem [resolvable:$false] %s956_s15 }
  0x41   : > { %v436_v46 = vrot.slane %v408_v39, %v288_v11  ;;  %v443_v48 = vrot.slane %v408_v39, %v442_v47  ;;  %v499_v49 = vrot.slane %v1193_v30, %v442_v47  ;;  %v450_v51 = vrot.slane %v408_v39, %v449_v50  ;;  %s958_s16 = scalar_lea.vmem %s957_s15, 512  ;;  %p959_p8 = scmp.lt.s32.totalorder %s1259_s17, %s957_s15 }
  0x42   : > { %v506_v52 = vrot.slane %v1193_v30, %v449_v50  ;;  %v457_v53 = vrot.slane %v408_v39, %v456_v34  ;;  %v464_v55 = vrot.slane %v408_v39, %v463_v54  ;;  %v351_v60 = vadd.s32 4294967288, %v346_v58  ;;  %p955_p13 = pneg %p954_p12  ;;  %p960_p10 = scmp.lt.s32.totalorder %s958_s16, %s952_s22 }
  0x43   : > { %v1217_v2 = vsub.s32 %v346_v58, %v1172_v1 }
  0x44   : > { %262 = vbcast.lane.b32.xlu1 %v256_v5, 264  ;;  %v354_v63 = vsub.s32 %v351_v60, %v1172_v1  ;;  %p961_p0 = por %p960_p10, %p959_p8 }
  0x46   : > { %p962_p2 = pnand %p961_p0, %p955_p13 }
  0x48   : > { %273 = vbcast.lane.b32.xlu1 %v267_v8, 264 }
  0x4c   : > { %280 = vbcast.lane.b32.xlu1 %v278_v10, 256 }
  0x50   : > { %284 = vbcast.lane.b32.xlu1 %v278_v10, 264 }
  0x53   : > { %269 = vbcast.lane.b32.xlu0 %v267_v8, 256 }
  0x54   : > { %291 = vbcast.lane.b32.xlu1 %v289_v13, 256 }
  0x58   : > { %295 = vbcast.lane.b32.xlu1 %v289_v13, 264 }
  0xb2   : > { %v259_v14 = vpop.permute.xlu1 %258 }
  0xb6   : > { %v263_v15 = vpop.permute.xlu1 %262 }
  0xba   : > { %v274_v16 = vpop.permute.xlu1 %273 }
  0xbe   : > { %v281_v17 = vpop.permute.xlu1 %280 }
  0xc2   : > { %v285_v23 = vpop.permute.xlu1 %284 }
  0xc6   : > { %v246_v18 = vpop.xlane.xlu0 %245  ;;  %v292_v28 = vpop.permute.xlu1 %291 }
  0xc7   : > { %v249_v19 = vmul.f32 0.0078125, %v246_v18 }
  0xc9   : > { %v305_v20 = vmul.f32 %v259_v14, %v249_v19  ;;  %v309_v27 = vmul.f32 %v281_v17, %v249_v19  ;;  %v311_v31 = vmul.f32 %v292_v28, %v249_v19 }
  0xca   : > { %v248_v21 = vpop.xlane.xlu0 %247  ;;  %v296_v35 = vpop.permute.xlu1 %295 }
  0xcb   : > { %v250_v22 = vmul.f32 0.0078125, %v248_v21  ;;  %322 = vperm.xlu1 %912, %v305_v20  }
  0xcd   : > { %v306_v24 = vmul.f32 %v263_v15, %v250_v22  ;;  %v308_v29 = vmul.f32 %v274_v16, %v250_v22  ;;  %v310_v32 = vmul.f32 %v285_v23, %v250_v22  ;;  %v312_v36 = vmul.f32 %v296_v35, %v250_v22 }
  0xce   : > { %v270_v25 = vpop.permute.xlu0 %269  ;;  %v520_v22 = vrot.slane %v1193_v30, %v463_v54 }
  0xcf   : > { %v307_v26 = vmul.f32 %v270_v25, %v249_v19  ;;  %325 = vperm.xlu0 %913, %v306_v24  }
  0xd1   : > { %328 = vperm.xlu1 %912, %v307_v26  }
  0xd3   : > { %334 = vperm.xlu0 %913, %v309_v27  }
  0xd5   : > { %331 = vperm.xlu1 %912, %v308_v29  }
  0xd7   : > { %340 = vperm.xlu0 %913, %v311_v31  }
  0xd9   : > { %337 = vperm.xlu1 %912, %v310_v32  }
  0xdb   : > { %494 = vbcast.lane.b32.xlu0 %v492_v33, 256 }
  0xdd   : > { %343 = vperm.xlu1 %912, %v312_v36  }
  0xdf   : > { %515 = vbcast.lane.b32.xlu0 %v513_v37, 256 }
  0xe1   : > { %403 = vbcast.lane.b32.xlu1 %v850_v38, 256 }
  0xe5   : > { %417 = vbcast.lane.b32.xlu1 %v415_v40, 256 }
  0xe9   : > { %424 = vbcast.lane.b32.xlu1 %v422_v41, 256 }
  0xed   : > { %473 = vbcast.lane.b32.xlu1 %v471_v42, 256 }
  0xf1   : > { %480 = vbcast.lane.b32.xlu1 %v478_v43, 256 }
  0xf5   : > { %431 = vbcast.lane.b32.xlu1 %v429_v44, 256 }
  0xf9   : > { %487 = vbcast.lane.b32.xlu1 %v485_v45, 256 }
  0xfd   : > { %438 = vbcast.lane.b32.xlu1 %v436_v46, 256 }
 0x101   : > { %445 = vbcast.lane.b32.xlu1 %v443_v48, 256 }
 0x105   : > { %501 = vbcast.lane.b32.xlu1 %v499_v49, 256 }
 0x109   : > { %452 = vbcast.lane.b32.xlu1 %v450_v51, 256 }
 0x10d   : > { %508 = vbcast.lane.b32.xlu1 %v506_v52, 256 }
 0x111   : > { %459 = vbcast.lane.b32.xlu1 %v457_v53, 256 }
 0x115   : > { %466 = vbcast.lane.b32.xlu1 %v464_v55, 256 }
 0x14a   : > { %v323_v56 = vpop.permute.xlu1 %322 }
 0x14b   : > { %v350_v0 = vrot.slane %v323_v56, %v1217_v2 }
 0x14e   : > { %v326_v57 = vpop.permute.xlu0 %325 }
 0x14f   : > { %v355_v7 = vrot.slane %v326_v57, %v354_v63 }
 0x150   : > { %v329_v59 = vpop.permute.xlu1 %328 }
 0x151   : > { %v361_v8 = vrot.slane %v329_v59, %v1217_v2  ;;  %v357_v15 = vsel %vm356_vm0, %v355_v7, %v350_v0 }
 0x152   : > { %v335_v61 = vpop.permute.xlu0 %334 }
 0x153   : > { %v370_v10 = vrot.slane %v335_v61, %v1217_v2 }
 0x154   : > { %v332_v62 = vpop.permute.xlu1 %331 }
 0x155   : > { %v365_v4 = vrot.slane %v332_v62, %v354_v63 }
 0x156   : > { %v341_v11 = vpop.permute.xlu0 %340 }
 0x157   : > { %v366_v12 = vsel %vm356_vm0, %v365_v4, %v361_v8  ;;  %v379_v1 = vrot.slane %v341_v11, %v1217_v2 }
 0x158   : > { %v338_v5 = vpop.permute.xlu1 %337  ;;  %v386_v17 = vsel %vm385_vm1, %v366_v12, %v357_v15 }
 0x159   : > { %v374_v9 = vrot.slane %v338_v5, %v354_v63 }
 0x15a   : > { %v495_v31 = vpop.permute.xlu0 %494 }
 0x15b   : > { %v375_v13 = vsel %vm356_vm0, %v374_v9, %v370_v10 }
 0x15c   : > { %v344_v14 = vpop.permute.xlu1 %343  ;;  %v388_v19 = vsel %vm387_vm2, %v375_v13, %v386_v17 }
 0x15d   : > { %v383_v16 = vrot.slane %v344_v14, %v354_v63 }
 0x15e   : > { %v516_v33 = vpop.permute.xlu0 %515 }
 0x15f   : > { %v384_v18 = vsel %vm356_vm0, %v383_v16, %v379_v1 }
 0x160   : > { %v390_v20 = vsel %vm389_vm3, %v384_v18, %v388_v19  ;;  %v404_v23 = vpop.permute.xlu1 %403 }
 0x161   : > { %v393_v21 = vsel %vm392_vm4, %v390_v20, 0.0 }
 0x162   : > { %394 = vadd.xlane.f32.xlu0 %v393_v21 }
 0x164   : > { %v418_v24 = vpop.permute.xlu1 %417 }
 0x168   : > { %v425_v25 = vpop.permute.xlu1 %424 }
 0x16c   : > { %v474_v26 = vpop.permute.xlu1 %473 }
 0x170   : > { %v481_v27 = vpop.permute.xlu1 %480 }
 0x174   : > { %v432_v28 = vpop.permute.xlu1 %431 }
 0x178   : > { %522 = vbcast.lane.b32.xlu0 %v520_v22, 256  ;;  %v488_v29 = vpop.permute.xlu1 %487 }
 0x17c   : > { %v439_v32 = vpop.permute.xlu1 %438 }
 0x180   : > { %v446_v34 = vpop.permute.xlu1 %445 }
 0x184   : > { %v502_v40 = vpop.permute.xlu1 %501 }
 0x188   : > { %v453_v42 = vpop.permute.xlu1 %452 }
 0x18c   : > { %v509_v47 = vpop.permute.xlu1 %508 }
 0x190   : > { %v460_v50 = vpop.permute.xlu1 %459 }
 0x194   : > { %v467_v55 = vpop.permute.xlu1 %466 }
 0x1ef   : > { %v395_v35 = vpop.xlane.xlu0 %394 }
 0x1f0   : > { %v406_v36 = vadd.f32 %v404_v23, %v395_v35 }
 0x1f2   : > { %v407_v37 = vmax.f32 %v406_v36, 0.0 }
 0x1f3   : > { %v523_v56 = vpop.permute.xlu0 %522 }
 0x1f4   : > { %v541_v38 = vmul.f32 %v425_v25, %v407_v37  ;;  %v540_v39 = vmul.f32 %v418_v24, %v407_v37  ;;  %v549_v30 = vmul.f32 %v481_v27, %v407_v37  ;;  %v548_v41 = vmul.f32 %v474_v26, %v407_v37 }
 0x1f5   : > { %v550_v43 = vmul.f32 %v488_v29, %v407_v37  ;;  %v542_v44 = vmul.f32 %v432_v28, %v407_v37  ;;  %v551_v45 = vmul.f32 %v495_v31, %v407_v37  ;;  %v543_v46 = vmul.f32 %v439_v32, %v407_v37 }
 0x1f6   : > { %576 = vperm.xlu0 %913, %v541_v38   ;;  %573 = vperm.xlu1 %912, %v540_v39   ;;  %v552_v48 = vmul.f32 %v502_v40, %v407_v37  ;;  %v544_v49 = vmul.f32 %v446_v34, %v407_v37  ;;  %v553_v51 = vmul.f32 %v509_v47, %v407_v37 }
 0x1f7   : > { %v545_v52 = vmul.f32 %v453_v42, %v407_v37  ;;  %v554_v53 = vmul.f32 %v516_v33, %v407_v37  ;;  %v546_v54 = vmul.f32 %v460_v50, %v407_v37  ;;  %v547_v57 = vmul.f32 %v467_v55, %v407_v37 }
 0x1f8   : > { %v555_v58 = vmul.f32 %v523_v56, %v407_v37 }
 0x1fa   : > { %600 = vperm.xlu0 %913, %v549_v30   ;;  %597 = vperm.xlu1 %912, %v548_v41  }
 0x1fe   : > { %603 = vperm.xlu0 %913, %v550_v43   ;;  %579 = vperm.xlu1 %912, %v542_v44  }
 0x202   : > { %606 = vperm.xlu0 %913, %v551_v45   ;;  %582 = vperm.xlu1 %912, %v543_v46   ;;  %v851_v46 = vld [vmem:[%s1314_s4] ss:$0 sm:$0xff] }
 0x206   : > { %609 = vperm.xlu0 %913, %v552_v48   ;;  %585 = vperm.xlu1 %912, %v544_v49  }
 0x20a   : > { %612 = vperm.xlu0 %913, %v553_v51   ;;  %588 = vperm.xlu1 %912, %v545_v52  }
 0x20e   : > { %615 = vperm.xlu0 %913, %v554_v53   ;;  %591 = vperm.xlu1 %912, %v546_v54  }
 0x212   : > { %594 = vperm.xlu1 %912, %v547_v57   ;;  %618 = vperm.xlu0 %913, %v555_v58  }
 0x275   : > { %v574_v59 = vpop.permute.xlu1 %573  ;;  %v577_v60 = vpop.permute.xlu0 %576 }
 0x276   : > { %v623_v0 = vrot.slane %v574_v59, %v1217_v2  ;;  %v627_v12 = vrot.slane %v577_v60, %v1217_v2 }
 0x278   : > { %v684_v22 = vsel %vm385_vm1, %v627_v12, %v623_v0 }
 0x279   : > { %v598_v61 = vpop.permute.xlu1 %597  ;;  %v601_v62 = vpop.permute.xlu0 %600 }
 0x27a   : > { %v655_v13 = vrot.slane %v598_v61, %v1217_v2  ;;  %v659_v14 = vrot.slane %v601_v62, %v1217_v2 }
 0x27c   : > { %v695_v23 = vsel %vm385_vm1, %v659_v14, %v655_v13 }
 0x27d   : > { %v580_v63 = vpop.permute.xlu1 %579  ;;  %v604_v4 = vpop.permute.xlu0 %603 }
 0x27e   : > { %v631_v15 = vrot.slane %v580_v63, %v1217_v2  ;;  %v663_v1 = vrot.slane %v604_v4, %v1217_v2 }
 0x280   : > { %v685_v26 = vsel %vm387_vm2, %v631_v15, %v684_v22  ;;  %v696_v27 = vsel %vm387_vm2, %v663_v1, %v695_v23 }
 0x281   : > { %v583_v5 = vpop.permute.xlu1 %582  ;;  %v607_v7 = vpop.permute.xlu0 %606 }
 0x282   : > { %v635_v16 = vrot.slane %v583_v5, %v1217_v2  ;;  %v667_v17 = vrot.slane %v607_v7, %v1217_v2 }
 0x284   : > { %v686_v31 = vsel %vm389_vm3, %v635_v16, %v685_v26  ;;  %v697_v32 = vsel %vm389_vm3, %v667_v17, %v696_v27 }
 0x285   : > { %v586_v8 = vpop.permute.xlu1 %585  ;;  %v610_v9 = vpop.permute.xlu0 %609 }
 0x286   : > { %v639_v18 = vrot.slane %v586_v8, %v1217_v2  ;;  %v671_v19 = vrot.slane %v610_v9, %v1217_v2 }
 0x288   : > { %v688_v33 = vsel %vm687_vm5, %v639_v18, %v686_v31  ;;  %v698_v34 = vsel %vm687_vm5, %v671_v19, %v697_v32 }
 0x289   : > { %v589_v10 = vpop.permute.xlu1 %588  ;;  %v613_v11 = vpop.permute.xlu0 %612 }
 0x28a   : > { %v643_v24 = vrot.slane %v589_v10, %v1217_v2  ;;  %v675_v25 = vrot.slane %v613_v11, %v1217_v2 }
 0x28c   : > { %v690_v37 = vsel %vm689_vm6, %v643_v24, %v688_v33  ;;  %v699_v38 = vsel %vm689_vm6, %v675_v25, %v698_v34 }
 0x28d   : > { %v592_v20 = vpop.permute.xlu1 %591  ;;  %v616_v21 = vpop.permute.xlu0 %615 }
 0x28e   : > { %v647_v28 = vrot.slane %v592_v20, %v1217_v2  ;;  %v679_v29 = vrot.slane %v616_v21, %v1217_v2 }
 0x290   : > { %v692_v30 = vsel %vm691_vm7, %v647_v28, %v690_v37  ;;  %v700_v41 = vsel %vm691_vm7, %v679_v29, %v699_v38 }
 0x291   : > { %v595_v35 = vpop.permute.xlu1 %594  ;;  %v619_v36 = vpop.permute.xlu0 %618 }
 0x292   : > { %v651_v39 = vrot.slane %v595_v35, %v1217_v2  ;;  %v683_v40 = vrot.slane %v619_v36, %v1217_v2 }
 0x294   : > { %v694_v42 = vsel %vm693_vm8, %v651_v39, %v692_v30  ;;  %v701_v43 = vsel %vm693_vm8, %v683_v40, %v700_v41 }
 0x295   : > { %v705_v44 = vsel %vm704_vm9, %v694_v42, 0.0  ;;  %v708_v45 = vsel %vm704_vm9, %v701_v43, 0.0 }
 0x296   : > { %706 = vadd.xlane.f32.xlu1 %v705_v44  ;;  %709 = vadd.xlane.f32.xlu0 %v708_v45 }
 0x2a7   : > { %722 = vbcast.lane.b32.xlu1 %v851_v46, 264 }
 0x2ac   : > { %718 = vbcast.lane.b32.xlu0 %v851_v46, 256 }
 0x323   : > { %v707_v47 = vpop.xlane.xlu1 %706  ;;  %v710_v48 = vpop.xlane.xlu0 %709 }
 0x327   : > { %v723_v49 = vpop.permute.xlu1 %722  ;;  %v719_v50 = vpop.permute.xlu0 %718 }
 0x328   : > { %v727_v51 = vadd.f32 %v723_v49, %v710_v48  ;;  %v726_v2 = vadd.f32 %v719_v50, %v707_v47 }
 0x32a   : > { %v853_v52 = vmul.f32 -1.442695, %v727_v51  ;;  %v852_v53 = vmul.f32 -1.442695, %v726_v2 }
 0x32c   : > { %914 = vpow2.f32 %v853_v52 }
 0x32d   : > { %916 = vpow2.f32 %v852_v53 }
 0x336   : > { %v915_v54 = vpop.eup %914 }
 0x337   : > { %v917_v55 = vpop.eup %916  ;;  %v735_v56 = vadd.f32 1.0, %v915_v54 }
 0x338   : > { %v734_v57 = vadd.f32 1.0, %v917_v55 }
 0x339   : > { %918 = vrcp.f32 %v735_v56 }
 0x33a   : > { %920 = vrcp.f32 %v734_v57 }
 0x343   : > { %v919_v58 = vpop.eup %918 }
 0x344   : > { %v921_v59 = vpop.eup %920  ;;  %747 = vperm.xlu0 %913, %v919_v58  }
 0x345   : > { %742 = vperm.xlu1 %912, %v921_v59  }
 0x3c3   : > { %v748_v60 = vpop.permute.xlu0 %747 }
 0x3c4   : > { %v743_v61 = vpop.permute.xlu1 %742  ;;  %v751_v62 = vadd.f32 %v748_v60, %v1184_v6 }
 0x3c5   : > { %v750_v63 = vadd.f32 %v743_v61, %v1177_v3 }
 0x3c6   : > { %753 = vst [vmem:[%s242_s13 + $0x8] sm:$0xff] %v751_v62 }
 0x3c7   : > { %752 = vst [vmem:[%s242_s13] sm:$0xff] %v750_v63 }
 0x3c8   : > { %965 = shalt.err (!%p962_p2)
}
 0x3c9   : > { %s966_s8 = scalar_lea.hbm %s1265_s14, 256  ;;  %s970_s10 = scalar_lea.hbm %s1315_s5, 512 }
 0x3ca   : > { %p967_p4 = scmp.ne.s32.totalorder %s1265_s14, %s966_s8  ;;  %p971_p9 = scmp.lt.u32.totalorder %s1265_s14, %s1315_s5 }
 0x3cb   : > { %p972_p1 = scmp.lt.u32.totalorder %s970_s10, %s966_s8  ;;  %p974_p6 = scmp.lt.u32.totalorder %s966_s8, %s1265_s14 }
 0x3cc   : > { %p968_p5 = pnand %p967_p4, %p1322_p11 }
 0x3cd   : > { %p973_p3 = por %p972_p1, %p971_p9 }
 0x3ce   : > { %p969_p7 = pneg %p968_p5 }
 0x3cf   : > { %p975_p12 = por %p974_p6, %p973_p3 }
 0x3d1   : > { %p976_p13 = pnand %p975_p12, %p969_p7 }
 0x3d3   : > { %979 = shalt.err (!%p976_p13)
}
 0x3d4   : > { %s1025_s26 = smov 128   ;;  %s1026_s28 = smov 8  }
 0x3d5   : > { %863 = dma.vmem_to_hbm [thread:$0]  (%p1322_p11), %s1259_s17, 256, %s1265_s14, %s755_s25, %s1025_s26, %s1025_s26, %s1026_s28  }
 0x3d6 PF: > { %s783_s12 = sand.u32 1, %s1006_s18   ;;  %p1323_p8 = scmp.ne.s32.totalorder %s1320_s6, 0 }
 0x3d7   : > { %p1324_p10 = scmp.ge.s32.totalorder %s1018_s21, 2  ;;  %s784_s22 = scalar_lea.sflag [#allocation4], %s783_s12 }
 0x3d9   : > { %p870_p0 = pnand %p1324_p10, %p1323_p8 }
 0x3db   : > { %1001 = dma.done.wait (!%p870_p0), %s784_s22, 256  }
 0x3dc   : > { %1003 = vsyncadd (!%p870_p0), %s784_s22, 4294967040  ;;  %p18_p2 = scmp.ge.s32.totalorder %s1082_s24, 4   ;;  %s1325_s18 = smov %s1010_s19 }
 0x3dd   : > { %s1326_s19 = smov %s1014_s20  ;;  %s1327_s20 = smov %s1094_s27 }
 0x3de   : > { %s1328_s21 = smov %s1082_s24  ;;  %20 = sbr.rel (!%p18_p2) target bundleno = 5 (0x5), region = 85 }
 0x3e5   :  { %789 = vsyncpa [#allocation3], 1 }
 0x3e6   :  { %791 = vsyncpa [#allocation3 + $0x1], 1 }
 0x3e7   :  { %792 = vsyncpa [#allocation4], 1 }
 0x3e8   :  { %794 = vsyncpa [#allocation4 + $0x1], 1 }

</bundles_post_ra>
